<compile_context>
chip_gen: v5e
topology: v5e:2x2
jax: 0.10.0
libtpu: 0.0.40
codegen_flags: <defaults>
</compile_context>

<pallas_src>
import functools

import jax
import jax.numpy as jnp
from jax import lax
from jax.experimental import pallas as pl
from jax.experimental.pallas import tpu as pltpu


def _lane_fold(a):
    # [C, TN] -> [C, 128]: sum 128-lane groups via lane-aligned slices (pure VALU,
    # no XLU cross-lane reduce in the hot loop).
    tn = a.shape[-1]
    s = a[:, 0:128]
    for k in range(1, tn // 128):
        s = s + a[:, k * 128:(k + 1) * 128]
    return s


def _dice_reduce_kernel(n_valid, logits_ref, true_ref, out_ref,
                        cnt_ref, prob_ref, inter_ref):
    # logits_ref: [C, TN] (bf16), true_ref: [1, TN] i32, out_ref: [3, C] f32
    # cnt/prob/inter_ref: [C, 128] f32 lane-partial accumulators (VMEM scratch).
    j = pl.program_id(1)

    @pl.when(j == 0)
    def _():
        cnt_ref[...] = jnp.zeros_like(cnt_ref)
        prob_ref[...] = jnp.zeros_like(prob_ref)
        inter_ref[...] = jnp.zeros_like(inter_ref)

    x = logits_ref[...].astype(jnp.float32)          # [C, TN]
    t = true_ref[...]                                # [1, TN] int32
    c, tn = x.shape

    # mask for the padded tail of the voxel axis
    col = j * tn + lax.broadcasted_iota(jnp.int32, (1, tn), 1)
    valid = col < n_valid                            # [1, TN] bool

    # softmax over the class axis (sublanes); denom reciprocal on the EUP slot
    m = jnp.max(x, axis=0, keepdims=True)
    e = jnp.exp(x - m)
    p = e * pl.reciprocal(jnp.sum(e, axis=0, keepdims=True), approx=True)

    cls_ids = lax.broadcasted_iota(jnp.int32, (c, tn), 0)
    is_cls = (cls_ids == t) & valid                  # [C, TN] one-hot mask

    cnt_ref[...] += _lane_fold(is_cls.astype(jnp.float32))   # sum(onehot)
    prob_ref[...] += _lane_fold(jnp.where(valid, p, 0.0))    # sum(prob)
    inter_ref[...] += _lane_fold(jnp.where(is_cls, p, 0.0))  # sum(prob*onehot)

    @pl.when(j == pl.num_programs(1) - 1)
    def _():
        out_ref[...] = jnp.stack([
            jnp.sum(cnt_ref[...], axis=1),           # per-class voxel counts
            jnp.sum(prob_ref[...], axis=1),          # per-class softmax mass
            jnp.sum(inter_ref[...], axis=1),         # per-class soft intersection
        ], axis=0)


def dice_loss_pallas(logits, true, smooth=1e-05, reduction="mean", weight=None,
                     tile_n=2048, stream_dtype=jnp.bfloat16):
    """Generalized Dice Loss. logits: [B, C, D, H, W] float, true: [B, D, H, W] int."""
    B, C, D, H, W = logits.shape
    DHW = D * H * W
    assert tile_n % 128 == 0
    tn = min(tile_n, pl.cdiv(DHW, 128) * 128)        # lane-tile of voxels
    dhw_pad = pl.cdiv(DHW, tn) * tn
    num_tiles = dhw_pad // tn

    # Native layout: pure reshapes, no HBM transpose.  Stream logits as bf16.
    logits_r = logits.reshape(B, C, DHW).astype(stream_dtype)
    true_r = true.reshape(B, 1, DHW).astype(jnp.int32)
    # TODO(synk): labels could stream as int8 when C < 128 for extra HBM savings.
    if dhw_pad != DHW:
        pad = dhw_pad - DHW
        logits_r = jnp.pad(logits_r, ((0, 0), (0, 0), (0, pad)))
        true_r = jnp.pad(true_r, ((0, 0), (0, 0), (0, pad)))

    sums_b = pl.pallas_call(
        functools.partial(_dice_reduce_kernel, DHW),
        out_shape=jax.ShapeDtypeStruct((B, 3, C), jnp.float32),
        grid_spec=pltpu.PrefetchScalarGridSpec(
            num_scalar_prefetch=0,
            grid=(B, num_tiles),
            in_specs=[
                pl.BlockSpec((None, C, tn), lambda b, j: (b, 0, j)),
                pl.BlockSpec((None, 1, tn), lambda b, j: (b, 0, j)),
            ],
            out_specs=pl.BlockSpec((None, 3, C), lambda b, j: (b, 0, 0)),
            scratch_shapes=[pltpu.VMEM((C, 128), jnp.float32)] * 3,
        ),
        compiler_params=pltpu.CompilerParams(
            # batch axis parallel (uses both TCs on v7x, distinct output slots);
            # voxel axis is the sequential reduction.
            dimension_semantics=("parallel", "arbitrary")),
    )(logits_r, true_r)

    sums = jnp.sum(sums_b, axis=0)                   # combine per-batch partials -> [3, C]
    sum_onehot, sum_prob, sum_inter = sums[0], sums[1], sums[2]

    if weight is None:
        w = 1.0 / (sum_onehot + smooth)
    else:
        w = jnp.asarray(weight, dtype=jnp.float32).reshape(-1)

    intersection = w * sum_inter
    cardinality = w * (sum_prob + sum_onehot)
    dice_per_class = (2.0 * intersection + smooth) / (cardinality + smooth)
    dice = jnp.mean(dice_per_class) if reduction == "mean" else jnp.sum(dice_per_class)
    return 1.0 - dice


def _dice_loss_ref(logits, true, smooth=1e-05):
    # pure-JAX f32 reference mirroring the PyTorch module
    prob = jax.nn.softmax(logits.astype(jnp.float32), axis=1)
    C = prob.shape[1]
    onehot = jax.nn.one_hot(true, C, dtype=jnp.float32)          # [B, D, H, W, C]
    onehot = jnp.transpose(onehot, (0, 4, 1, 2, 3))              # [B, C, D, H, W]
    dims = (0, 2, 3, 4)
    w = 1.0 / (jnp.sum(onehot, axis=dims, keepdims=True) + smooth)
    inter = jnp.sum(w * prob * onehot, axis=dims)
    card = jnp.sum(w * (prob + onehot), axis=dims)
    dice = (2.0 * inter + smooth) / (card + smooth)
    return 1.0 - jnp.mean(dice)


if __name__ == "__main__":
    key = jax.random.PRNGKey(0)
    k1, k2 = jax.random.split(key)
    B, C, D, H, W = 2, 4, 4, 8, 8          # N = 2*4*8*8 = 512 voxels
    logits = jax.random.normal(k1, (B, C, D, H, W), dtype=jnp.float32)
    true = jax.random.randint(k2, (B, D, H, W), 0, C, dtype=jnp.int32)

    loss = dice_loss_pallas(logits, true)
    loss = jax.block_until_ready(loss)

    ref = _dice_loss_ref(logits, true)
    # bf16 streaming + approx reciprocal perturb the softmax slightly -> looser tol.
    assert jnp.allclose(loss, ref, rtol=5e-3, atol=5e-3), (loss, ref)
    print("KERNEL_OK")
</pallas_src>

<mosaic_0001>
module attributes {stable_mosaic.version = 11 : i64} {
  func.func @_dice_reduce_kernel(%arg0: i32, %arg1: i32, %arg2: memref<1x4x256xbf16, #tpu.memory_space<vmem>>, %arg3: memref<1x1x256xi32, #tpu.memory_space<vmem>>, %arg4: memref<1x3x4xf32, #tpu.memory_space<vmem>>, %arg5: memref<4x128xf32, #tpu.memory_space<vmem>>, %arg6: memref<4x128xf32, #tpu.memory_space<vmem>>, %arg7: memref<4x128xf32, #tpu.memory_space<vmem>>) attributes {dimension_semantics = [#tpu.dimension_semantics<parallel>, #tpu.dimension_semantics<arbitrary>], iteration_bounds = array<i64: 2, 1>, scalar_prefetch = 0 : i64, scratch_operands = 3 : i64, tpu.core_type = #tpu.core_type<tc>, window_params = [{transform_indices = @transform_0, window_bounds = array<i64: 1, 4, 256>}, {transform_indices = @transform_1, window_bounds = array<i64: 1, 1, 256>}, {transform_indices = @transform_2, window_bounds = array<i64: 1, 3, 4>}]} {
    %c0_i32 = arith.constant 0 : i32
    %0 = arith.cmpi eq, %arg1, %c0_i32 : i32
    %1 = arith.extui %0 : i1 to i32
    %c0_i32_0 = arith.constant 0 : i32
    %2 = arith.cmpi ne, %1, %c0_i32_0 : i32
    scf.if %2 {
      %cst_24 = arith.constant 0.000000e+00 : f32
      %58 = vector.broadcast %cst_24 : f32 to vector<4x128xf32>
      %c0_25 = arith.constant 0 : index
      %c0_26 = arith.constant 0 : index
      %59 = vector.load %arg5[%c0_25, %c0_26] : memref<4x128xf32, #tpu.memory_space<vmem>>, vector<4x128xf32>
      tpu.vector_store %arg5[%c0_25, %c0_26], %58 {strides = array<i32>} : memref<4x128xf32, #tpu.memory_space<vmem>>, vector<4x128xf32>,
      %cst_27 = arith.constant 0.000000e+00 : f32
      %60 = vector.broadcast %cst_27 : f32 to vector<4x128xf32>
      %c0_28 = arith.constant 0 : index
      %c0_29 = arith.constant 0 : index
      %61 = vector.load %arg6[%c0_28, %c0_29] : memref<4x128xf32, #tpu.memory_space<vmem>>, vector<4x128xf32>
      tpu.vector_store %arg6[%c0_28, %c0_29], %60 {strides = array<i32>} : memref<4x128xf32, #tpu.memory_space<vmem>>, vector<4x128xf32>,
      %cst_30 = arith.constant 0.000000e+00 : f32
      %62 = vector.broadcast %cst_30 : f32 to vector<4x128xf32>
      %c0_31 = arith.constant 0 : index
      %c0_32 = arith.constant 0 : index
      %63 = vector.load %arg7[%c0_31, %c0_32] : memref<4x128xf32, #tpu.memory_space<vmem>>, vector<4x128xf32>
      tpu.vector_store %arg7[%c0_31, %c0_32], %62 {strides = array<i32>} : memref<4x128xf32, #tpu.memory_space<vmem>>, vector<4x128xf32>,
    } else {
    }
    %c0 = arith.constant 0 : index
    %c0_1 = arith.constant 0 : index
    %c0_2 = arith.constant 0 : index
    %3 = vector.load %arg2[%c0, %c0_1, %c0_2] : memref<1x4x256xbf16, #tpu.memory_space<vmem>>, vector<1x4x256xbf16>
    %4 = vector.shape_cast %3 : vector<1x4x256xbf16> to vector<4x256xbf16>
    %5 = arith.extf %4 : vector<4x256xbf16> to vector<4x256xf32>
    %c0_3 = arith.constant 0 : index
    %c0_4 = arith.constant 0 : index
    %c0_5 = arith.constant 0 : index
    %6 = vector.load %arg3[%c0_3, %c0_4, %c0_5] : memref<1x1x256xi32, #tpu.memory_space<vmem>>, vector<1x1x256xi32>
    %7 = vector.shape_cast %6 : vector<1x1x256xi32> to vector<1x256xi32>
    %c256_i32 = arith.constant 256 : i32
    %8 = arith.muli %arg1, %c256_i32 : i32
    %9 = tpu.iota {dimensions = array<i32: 1>} : vector<1x256xi32>
    %10 = vector.broadcast %8 : i32 to vector<1x256xi32>
    %11 = arith.addi %10, %9 : vector<1x256xi32>
    %c256_i32_6 = arith.constant 256 : i32
    %12 = vector.broadcast %c256_i32_6 : i32 to vector<1x256xi32>
    %13 = arith.cmpi slt, %11, %12 : vector<1x256xi32>
    %cst = arith.constant dense<0xFF800000> : vector<256xf32>
    %14 = vector.multi_reduction <maximumf>, %5, %cst [0] : vector<4x256xf32> to vector<256xf32>
    %15 = vector.shape_cast %14 : vector<256xf32> to vector<1x256xf32>
    %16 = vector.broadcast %15 : vector<1x256xf32> to vector<4x256xf32>
    %17 = arith.subf %5, %16 : vector<4x256xf32>
    %18 = math.exp %17 : vector<4x256xf32>
    %cst_7 = arith.constant dense<0.000000e+00> : vector<256xf32>
    %19 = vector.multi_reduction <add>, %18, %cst_7 [0] : vector<4x256xf32> to vector<256xf32>
    %20 = vector.shape_cast %19 : vector<256xf32> to vector<1x256xf32>
    %21 = tpu.reciprocal %20 {approx = true} : vector<1x256xf32> -> vector<1x256xf32>
    %22 = vector.broadcast %21 : vector<1x256xf32> to vector<4x256xf32>
    %23 = arith.mulf %18, %22 : vector<4x256xf32>
    %24 = tpu.iota {dimensions = array<i32: 0>} : vector<4x256xi32>
    %25 = vector.broadcast %7 : vector<1x256xi32> to vector<4x256xi32>
    %26 = arith.cmpi eq, %24, %25 : vector<4x256xi32>
    %27 = vector.broadcast %13 : vector<1x256xi1> to vector<4x256xi1>
    %28 = arith.andi %26, %27 : vector<4x256xi1>
    %c0_8 = arith.constant 0 : index
    %c0_9 = arith.constant 0 : index
    %29 = vector.load %arg5[%c0_8, %c0_9] : memref<4x128xf32, #tpu.memory_space<vmem>>, vector<4x128xf32>
    %30 = arith.extui %28 : vector<4x256xi1> to vector<4x256xi32>
    %31 = arith.sitofp %30 : vector<4x256xi32> to vector<4x256xf32>
    %32 = vector.extract_strided_slice %31 {offsets = [0, 0], sizes = [4, 128], strides = [1, 1]} : vector<4x256xf32> to vector<4x128xf32>
    %33 = vector.extract_strided_slice %31 {offsets = [0, 128], sizes = [4, 128], strides = [1, 1]} : vector<4x256xf32> to vector<4x128xf32>
    %34 = arith.addf %32, %33 : vector<4x128xf32>
    %35 = arith.addf %29, %34 : vector<4x128xf32>
    %c0_10 = arith.constant 0 : index
    %c0_11 = arith.constant 0 : index
    %36 = vector.load %arg5[%c0_10, %c0_11] : memref<4x128xf32, #tpu.memory_space<vmem>>, vector<4x128xf32>
    tpu.vector_store %arg5[%c0_10, %c0_11], %35 {strides = array<i32>} : memref<4x128xf32, #tpu.memory_space<vmem>>, vector<4x128xf32>,
    %c0_12 = arith.constant 0 : index
    %c0_13 = arith.constant 0 : index
    %37 = vector.load %arg6[%c0_12, %c0_13] : memref<4x128xf32, #tpu.memory_space<vmem>>, vector<4x128xf32>
    %cst_14 = arith.constant 0.000000e+00 : f32
    %38 = vector.shape_cast %13 : vector<1x256xi1> to vector<1x256xi1>
    %39 = vector.broadcast %38 : vector<1x256xi1> to vector<4x256xi1>
    %40 = vector.broadcast %cst_14 : f32 to vector<4x256xf32>
    %41 = arith.select %39, %23, %40 : vector<4x256xi1>, vector<4x256xf32>
    %42 = vector.extract_strided_slice %41 {offsets = [0, 0], sizes = [4, 128], strides = [1, 1]} : vector<4x256xf32> to vector<4x128xf32>
    %43 = vector.extract_strided_slice %41 {offsets = [0, 128], sizes = [4, 128], strides = [1, 1]} : vector<4x256xf32> to vector<4x128xf32>
    %44 = arith.addf %42, %43 : vector<4x128xf32>
    %45 = arith.addf %37, %44 : vector<4x128xf32>
    %c0_15 = arith.constant 0 : index
    %c0_16 = arith.constant 0 : index
    %46 = vector.load %arg6[%c0_15, %c0_16] : memref<4x128xf32, #tpu.memory_space<vmem>>, vector<4x128xf32>
    tpu.vector_store %arg6[%c0_15, %c0_16], %45 {strides = array<i32>} : memref<4x128xf32, #tpu.memory_space<vmem>>, vector<4x128xf32>,
    %c0_17 = arith.constant 0 : index
    %c0_18 = arith.constant 0 : index
    %47 = vector.load %arg7[%c0_17, %c0_18] : memref<4x128xf32, #tpu.memory_space<vmem>>, vector<4x128xf32>
    %cst_19 = arith.constant 0.000000e+00 : f32
    %48 = vector.broadcast %cst_19 : f32 to vector<4x256xf32>
    %49 = arith.select %28, %23, %48 : vector<4x256xi1>, vector<4x256xf32>
    %50 = vector.extract_strided_slice %49 {offsets = [0, 0], sizes = [4, 128], strides = [1, 1]} : vector<4x256xf32> to vector<4x128xf32>
    %51 = vector.extract_strided_slice %49 {offsets = [0, 128], sizes = [4, 128], strides = [1, 1]} : vector<4x256xf32> to vector<4x128xf32>
    %52 = arith.addf %50, %51 : vector<4x128xf32>
    %53 = arith.addf %47, %52 : vector<4x128xf32>
    %c0_20 = arith.constant 0 : index
    %c0_21 = arith.constant 0 : index
    %54 = vector.load %arg7[%c0_20, %c0_21] : memref<4x128xf32, #tpu.memory_space<vmem>>, vector<4x128xf32>
    tpu.vector_store %arg7[%c0_20, %c0_21], %53 {strides = array<i32>} : memref<4x128xf32, #tpu.memory_space<vmem>>, vector<4x128xf32>,
    %c0_i32_22 = arith.constant 0 : i32
    %55 = arith.cmpi eq, %arg1, %c0_i32_22 : i32
    %56 = arith.extui %55 : i1 to i32
    %c0_i32_23 = arith.constant 0 : i32
    %57 = arith.cmpi ne, %56, %c0_i32_23 : i32
    scf.if %57 {
      %c0_24 = arith.constant 0 : index
      %c0_25 = arith.constant 0 : index
      %58 = vector.load %arg5[%c0_24, %c0_25] : memref<4x128xf32, #tpu.memory_space<vmem>>, vector<4x128xf32>
      %cst_26 = arith.constant dense<0.000000e+00> : vector<4xf32>
      %59 = vector.multi_reduction <add>, %58, %cst_26 [1] : vector<4x128xf32> to vector<4xf32>
      %c0_27 = arith.constant 0 : index
      %c0_28 = arith.constant 0 : index
      %60 = vector.load %arg6[%c0_27, %c0_28] : memref<4x128xf32, #tpu.memory_space<vmem>>, vector<4x128xf32>
      %cst_29 = arith.constant dense<0.000000e+00> : vector<4xf32>
      %61 = vector.multi_reduction <add>, %60, %cst_29 [1] : vector<4x128xf32> to vector<4xf32>
      %c0_30 = arith.constant 0 : index
      %c0_31 = arith.constant 0 : index
      %62 = vector.load %arg7[%c0_30, %c0_31] : memref<4x128xf32, #tpu.memory_space<vmem>>, vector<4x128xf32>
      %cst_32 = arith.constant dense<0.000000e+00> : vector<4xf32>
      %63 = vector.multi_reduction <add>, %62, %cst_32 [1] : vector<4x128xf32> to vector<4xf32>
      %64 = vector.shape_cast %59 : vector<4xf32> to vector<1x4xf32>
      %65 = vector.shape_cast %61 : vector<4xf32> to vector<1x4xf32>
      %66 = vector.shape_cast %63 : vector<4xf32> to vector<1x4xf32>
      %67 = tpu.concatenate %64, %65, %66 in 0 : vector<1x4xf32>, vector<1x4xf32>, vector<1x4xf32> -> vector<3x4xf32>
      %c0_33 = arith.constant 0 : index
      %c0_34 = arith.constant 0 : index
      %c0_35 = arith.constant 0 : index
      %68 = vector.load %arg4[%c0_33, %c0_34, %c0_35] : memref<1x3x4xf32, #tpu.memory_space<vmem>>, vector<1x3x4xf32>
      %69 = vector.shape_cast %68 : vector<1x3x4xf32> to vector<3x4xf32>
      %70 = vector.shape_cast %67 : vector<3x4xf32> to vector<1x3x4xf32>
      tpu.vector_store %arg4[%c0_33, %c0_34, %c0_35], %70 {strides = array<i32>} : memref<1x3x4xf32, #tpu.memory_space<vmem>>, vector<1x3x4xf32>,
    } else {
    }
    return
  }
  func.func @transform_0(%arg0: i32, %arg1: i32) -> (i32, i32, i32) {
    %c0_i32 = arith.constant 0 : i32
    %c0_i32_0 = arith.constant 0 : i32
    return %arg0, %c0_i32, %arg1 : i32, i32, i32
  }
  func.func @transform_1(%arg0: i32, %arg1: i32) -> (i32, i32, i32) {
    %c0_i32 = arith.constant 0 : i32
    %c0_i32_0 = arith.constant 0 : i32
    return %arg0, %c0_i32, %arg1 : i32, i32, i32
  }
  func.func @transform_2(%arg0: i32, %arg1: i32) -> (i32, i32, i32) {
    %c0_i32 = arith.constant 0 : i32
    %c0_i32_0 = arith.constant 0 : i32
    %c0_i32_1 = arith.constant 0 : i32
    return %arg0, %c0_i32, %c0_i32_0 : i32, i32, i32
  }
}

</mosaic_0001>

<bundles_post_ra>
// kernel: tpu_custom_call.1
= control target key start
LH: loop header
LB: loop body
LE: loop exit
PB: predicated region body
PF: predicated region fallthrough
CT: control target
= control target key end

     0   :  { %7 = vsyncpa [#allocation6], 0  ;;  %s824_s0 = inlined_call_operand.hbm [shape: bf16[2,4,256], index: 0, kind: input, shape index: {}]   ;;  %s825_s1 = inlined_call_operand.hbm [shape: s32[2,1,256], index: 1, kind: input, shape index: {}]   ;;  %s826_s2 = inlined_call_operand.vmem [shape: f32[2,3,4], index: 2, kind: output, shape index: {}]  }
   0x1   :  { %9 = vsyncpa [#allocation6 + $0x1], 0 }
   0x2   :  { %10 = vsyncpa [#allocation8], 0 }
   0x3   :  { %12 = vsyncpa [#allocation8 + $0x1], 0  ;;  %s690_s9 = smov 0   ;;  %s692_s10 = smov 0  }
   0x4   :  { %s694_s11 = smov 0   ;;  %s696_s12 = smov 0  }
   0x5   :  { %s698_s13 = smov 0   ;;  %s700_s14 = smov 0  }
   0x6 LB: > { %s473_s15 = sadd.s32 4294967295, %s672_s14   ;;  %s30_s16 = sadd.s32 1, %s668_s13  ;;  %s672_s14 = sphi %s700_s14, %s18_s14   ;;  %s668_s13 = sphi %s698_s13, %s838_s13   ;;  %s664_s12 = sphi %s696_s12, %s837_s12   ;;  %s660_s11 = sphi %s694_s11, %s836_s11   ;;  %s656_s10 = sphi %s692_s10, %s835_s10   ;;  %s652_s9 = sphi %s690_s9, %s834_s9  }
   0x7   : > { %p32_p0 = scmp.ge.s32.totalorder %s30_s16, 2  ;;  %s39_s17 = sadd.s32 1, %s660_s11 }
   0x8   : > { %p46_p1 = scmp.ne.s32.totalorder %s660_s11, %s656_s10  ;;  %p47_p2 = scmp.eq.s32.totalorder %s672_s14, 0 }
   0x9   : > { %s840_s16 = smov (%p32_p0, %s30_s16), 0  ;;  %p52_p4 = scmp.ne.s32.totalorder %s656_s10, %s652_s9 }
   0xa   : > { %p726_p3 = por %p47_p2, %p46_p1  ;;  %s34_s19 = ssub.s32 %s668_s13, %s840_s16 }
   0xb   : > { %p53_p5 = scmp.eq.s32.totalorder %s473_s15, 0  ;;  %p37_p6 = scmp.eq.s32.totalorder %s34_s19, 0 }
   0xc   : > { %p502_p8 = scmp.lt.s32.totalorder %s672_s14, 2  ;;  %s130_s22 = sand.u32 1, %s660_s11  }
   0xd   : > { %p733_p7 = por %p53_p5, %p52_p4  ;;  %s490_s23 = sshll.u32 %s668_s13, 2 }
   0xe   : > { %s739_s21 = scalar_select %p37_p6, %s660_s11, %s39_s17  }
   0xf   : > { %s477_s24 = sshll.u32 %s130_s22, 2  ;;  %s141_s27 = scalar_lea.hbm %s824_s0, %s490_s23 }
  0x10   : > { %s143_s28 = sshll.u32 %s141_s27, 4  ;;  %s134_s29 = scalar_lea.vmem [#allocation5], %s477_s24  ;;  %s144_s28 = int_to_ptr.hbm [resolvable:$true] %s143_s28 }
  0x11   : > { %s145_s30 = sshll.u32 %s134_s29, 4  ;;  %p748_p9 = pnand %p502_p8, %p726_p3  ;;  %s146_s30 = int_to_ptr.vmem [resolvable:$true] %s145_s30 }
  0x12   : > { %p482_p10 = scmp.ge.s32.totalorder %s672_s14, 1  ;;  %p171_p11 = scmp.lt.s32.totalorder %s672_s14, 3 }
  0x13   : > { %s480_s4 = sshll.u32 %s130_s22, 1  ;;  %s131_s5 = scalar_lea.sflag [#allocation6], %s130_s22 }
  0x14   : > { %498 = dma.hbm_to_vmem [thread:$0]  (!%p748_p9), %s144_s28, 64, %s146_s30, %s131_s5  }
  0x15   : > { %p172_p12 = pnand %p482_p10, %p171_p11  ;;  %s481_s6 = sshll.u32 %s668_s13, 1 }
  0x16   : > { %s156_s7 = scalar_lea.vmem [#allocation7], %s480_s4  ;;  %s162_s17 = scalar_lea.hbm %s825_s1, %s481_s6 }
  0x17   : > { %s166_s8 = sshll.u32 %s156_s7, 4  ;;  %s164_s18 = sshll.u32 %s162_s17, 4  ;;  %s167_s8 = int_to_ptr.vmem [resolvable:$true] %s166_s8  ;;  %s165_s18 = int_to_ptr.hbm [resolvable:$true] %s164_s18 }
  0x18   : > { %s153_s19 = scalar_lea.sflag [#allocation8], %s130_s22  ;;  %175 = sbr.rel (%p172_p12) target bundleno = 256 (0x100), region = 28 }
  0x19   : > { %501 = dma.hbm_to_vmem [thread:$0]  (!%p748_p9), %s165_s18, 32, %s167_s8, %s153_s19  }
  0x1a   : > { %s177_s23 = sand.u32 (!%p172_p12), 1, %s656_s10  }
  0x1b   : > { %s483_s24 = sshll.u32 (!%p172_p12), %s177_s23, 2  ;;  %s178_s25 = scalar_lea.sflag (!%p172_p12), [#allocation6], %s177_s23 }
  0x1c   : > { %s181_s26 = scalar_lea.vmem (!%p172_p12), [#allocation5], %s483_s24 }
  0x1d   : > { %643 = dma.done.wait (%p733_p7), %s178_s25, 64  }
  0x1e   : > { %645 = vsyncadd (%p733_p7), %s178_s25, 4294967232  ;;  %s484_s27 = sshll.u32 %s177_s23, 1  ;;  %s188_s28 = scalar_lea.sflag [#allocation8], %s177_s23 }
  0x1f   : > { %s767_s29 = scalar_lea.vmem [#allocation7], %s484_s27 }
  0x20   : > { %647 = dma.done.wait (%p733_p7), %s188_s28, 32  }
  0x21   : > { %649 = vsyncadd (%p733_p7), %s188_s28, 4294967264  ;;  %v674_v0 = vmov 0.0   ;;  %v230_v1 = vld [vmem:[%s181_s26] sm:$0xf]  ;;  %vm248_vm0 = vcmask 1043456   ;;  %v234_v23 = vlaneseq  ;;  %p219_p13 = scmp.lt.s32.totalorder %s664_s12, 1 }
  0x22   : > { %227 = vst [vmem:[#allocation2] sm:$0xf] %v674_v0  ;;  %v231_v2 = vunpack.c.l.bf16 %v230_v1  ;;  %v232_v24 = vld [vmem:[%s767_s29] sm:$0x3]  ;;  %vm366_vm3 = vcmask 1040384   ;;  %vm368_vm4 = vcmask 1041408  }
  0x23   : > { %228 = vst [vmem:[#allocation3] sm:$0xf] %v674_v0  ;;  %v300_v25 = vshrl.u32 %v234_v23, 7  ;;  %v301_v26 = vperm.slane %v232_v24, 0  ;;  %v302_v27 = vperm.slane %v232_v24, 1  ;;  %s842_s12 = smov (!%p219_p13, %s664_s12), 1 }
  0x24   : > { %229 = vst [vmem:[#allocation4] sm:$0xf] %v674_v0  ;;  %s485_s20 = sshll.u32 %s842_s12, 2  ;;  %vm370_vm5 = vcmask 26624  }
  0x25   : > { %243 = vst [vmem:[#allocation1] ss:$2 sm:$0xff] %v231_v2  ;;  %vm778_vm1 = vcmp.eq.s32.totalorder %v300_v25, %v301_v26  ;;  %vm782_vm2 = vcmp.eq.s32.totalorder %v300_v25, %v302_v27  ;;  %s222_s3 = scalar_lea.vmem %s826_s2, %s485_s20 }
  0x26   : > { %v486_v32 = vsel %vm778_vm1, 1.0, %v674_v0  ;;  %v487_v33 = vsel %vm782_vm2, 1.0, %v674_v0 }
  0x27   : > { %v316_v34 = vadd.f32 %v487_v33, %v486_v32 }
  0x29   : > { %v311_v31 = vld [vmem:[#allocation2] sm:$0xf] }
  0x2a   : > { %v317_v35 = vadd.f32 %v316_v34, %v311_v31  ;;  %v319_v59 = vld [vmem:[#allocation3] sm:$0xf] }
  0x2c   : > { %v244_v3 = vld.sshfl [vmem:[#allocation1] sm:$0xff pattern:$0x75316420]  ;;  %v245_v4 = vld.sshfl [vmem:[#allocation1 + $0x8] sm:$0xff pattern:$0x75316420] }
  0x2d   : > { %v249_v5 = vsel %vm248_vm0, %v244_v3, -inf  ;;  %v256_v6 = vsel %vm248_vm0, %v245_v4, -inf  ;;  %318 = vst [vmem:[#allocation2] sm:$0xf] %v317_v35 }
  0x2e   : > { %v250_v7 = vrot.slane %v249_v5, 4  ;;  %v257_v8 = vrot.slane %v256_v6, 4 }
  0x30   : > { %v251_v9 = vmax.f32 %v249_v5, %v250_v7  ;;  %v258_v10 = vmax.f32 %v256_v6, %v257_v8 }
  0x32   : > { %v252_v11 = vrot.slane %v251_v9, 2  ;;  %v259_v12 = vrot.slane %v258_v10, 2 }
  0x34   : > { %v253_v13 = vmax.f32 %v251_v9, %v252_v11  ;;  %v260_v14 = vmax.f32 %v258_v10, %v259_v12  ;;  %v345_v46 = vld [vmem:[#allocation2] sm:$0xf]  ;;  %v235_v12 = vand.u32 127, %v234_v23 }
  0x35   : > { %v346_v47 = vsel %vm248_vm0, %v345_v46, 0.0 }
  0x36   : > { %v254_v15 = vrot.slane %v253_v13, 1  ;;  %v261_v16 = vrot.slane %v260_v14, 1  ;;  %347 = vadd.xlane.f32.xlu0 %v346_v47 }
  0x38   : > { %v255_v17 = vmax.f32 %v253_v13, %v254_v15  ;;  %v262_v18 = vmax.f32 %v260_v14, %v261_v16 }
  0x3a   : > { %v265_v19 = vrot.slane %v262_v18, 4 }
  0x3c   : > { %v266_v20 = vsel %vm248_vm0, %v255_v17, %v265_v19 }
  0x3d   : > { %v268_v21 = vsub.f32 %v231_v2, %v266_v20  ;;  %v331_v2 = vld [vmem:[#allocation4] sm:$0xf] }
  0x3f   : > { %v269_v22 = vmul.f32 1.442695, %v268_v21 }
  0x41   : > { %552 = vpow2.f32 %v269_v22 }
  0x47   : > { %v553_v28 = vpop.eup %552 }
  0x48   : > { %272 = vst [vmem:[#allocation1] ss:$2 sm:$0xff] %v553_v28 }
  0x4f   : > { %v273_v36 = vld.sshfl [vmem:[#allocation1] sm:$0xff pattern:$0x75316420]  ;;  %v274_v37 = vld.sshfl [vmem:[#allocation1 + $0x8] sm:$0xff pattern:$0x75316420] }
  0x50   : > { %v277_v38 = vsel %vm248_vm0, %v273_v36, 0.0  ;;  %v284_v39 = vsel %vm248_vm0, %v274_v37, 0.0 }
  0x51   : > { %v278_v40 = vrot.slane %v277_v38, 4  ;;  %v285_v41 = vrot.slane %v284_v39, 4 }
  0x53   : > { %v279_v42 = vadd.f32 %v278_v40, %v277_v38  ;;  %v286_v43 = vadd.f32 %v285_v41, %v284_v39 }
  0x55   : > { %v280_v44 = vrot.slane %v279_v42, 2  ;;  %v287_v45 = vrot.slane %v286_v43, 2 }
  0x57   : > { %v281_v48 = vadd.f32 %v280_v44, %v279_v42  ;;  %v288_v49 = vadd.f32 %v287_v45, %v286_v43 }
  0x59   : > { %v282_v50 = vrot.slane %v281_v48, 1  ;;  %v289_v51 = vrot.slane %v288_v49, 1 }
  0x5b   : > { %v283_v52 = vadd.f32 %v282_v50, %v281_v48  ;;  %v290_v53 = vadd.f32 %v289_v51, %v288_v49 }
  0x5d   : > { %554 = vrcp.f32 %v283_v52 }
  0x5e   : > { %556 = vrcp.f32 %v290_v53 }
  0x63   : > { %v555_v54 = vpop.eup %554 }
  0x64   : > { %v557_v55 = vpop.eup %556 }
  0x65   : > { %v295_v56 = vrot.slane %v557_v55, 4 }
  0x67   : > { %v296_v57 = vsel %vm248_vm0, %v555_v54, %v295_v56 }
  0x68   : > { %v298_v58 = vmul.f32 %v553_v28, %v296_v57 }
  0x6a   : > { %321 = vst [vmem:[#allocation1] ss:$2 sm:$0xff] %v298_v58 }
  0x71   : > { %v322_v60 = vld.sshfl [vmem:[#allocation1] sm:$0xff pattern:$0x75316420]  ;;  %v323_v61 = vld.sshfl [vmem:[#allocation1 + $0x8] sm:$0xff pattern:$0x75316420] }
  0x72   : > { %v328_v62 = vadd.f32 %v323_v61, %v322_v60  ;;  %332 = vst [vmem:[#allocation1] ss:$2 sm:$0xff] %v298_v58 }
  0x74   : > { %v329_v63 = vadd.f32 %v328_v62, %v319_v59 }
  0x76   : > { %330 = vst [vmem:[#allocation3] sm:$0xf] %v329_v63 }
  0x79   : > { %v333_v0 = vld.sshfl [vmem:[#allocation1] sm:$0xff pattern:$0x75316420]  ;;  %v334_v1 = vld.sshfl [vmem:[#allocation1 + $0x8] sm:$0xff pattern:$0x75316420] }
  0x7a   : > { %v337_v3 = vsel %vm778_vm1, %v333_v0, 0.0  ;;  %v338_v4 = vsel %vm782_vm2, %v334_v1, 0.0 }
  0x7b   : > { %v339_v5 = vadd.f32 %v338_v4, %v337_v3 }
  0x7d   : > { %v349_v6 = vld [vmem:[#allocation3] sm:$0xf]  ;;  %v340_v7 = vadd.f32 %v339_v5, %v331_v2 }
  0x7e   : > { %v350_v8 = vsel %vm248_vm0, %v349_v6, 0.0 }
  0x7f   : > { %351 = vadd.xlane.f32.xlu0 %v350_v8  ;;  %341 = vst [vmem:[#allocation4] sm:$0xf] %v340_v7 }
  0x86   : > { %v353_v9 = vld [vmem:[#allocation4] sm:$0xf] }
  0x87   : > { %v354_v10 = vsel %vm248_vm0, %v353_v9, 0.0 }
  0x88   : > { %355 = vadd.xlane.f32.xlu1 %v354_v10 }
  0xa9   : > { %v348_v11 = vpop.xlane.xlu0 %347 }
  0xaa   : > { %v358_v14 = vperm.slane %v348_v11, %v235_v12 }
  0xf2   : > { %v352_v13 = vpop.xlane.xlu0 %351 }
  0xf3   : > { %v361_v15 = vperm.slane %v352_v13, %v235_v12 }
  0xf5   : > { %v367_v18 = vsel %vm366_vm3, %v358_v14, %v361_v15 }
  0xfb   : > { %v356_v16 = vpop.xlane.xlu1 %355 }
  0xfc   : > { %v364_v17 = vperm.slane %v356_v16, %v235_v12 }
  0xfe   : > { %v369_v19 = vsel %vm368_vm4, %v367_v18, %v364_v17 }
  0xff   : > { %371 = vst.msk [vmem:[%s222_s3] sm:$0x7] %vm370_vm5, %v369_v19 }
 0x100 PF: > { %s18_s14 = sadd.s32 1, %s672_s14   ;;  %s834_s9 = smov %s656_s10 }
 0x101   : > { %p15_p0 = scmp.ge.s32.totalorder %s18_s14, 4   ;;  %s835_s10 = smov %s660_s11 }
 0x102   : > { %s836_s11 = smov %s739_s21  ;;  %s837_s12 = smov %s668_s13 }
 0x103   : > { %s838_s13 = smov %s840_s16  ;;  %17 = sbr.rel (!%p15_p0) target bundleno = 6 (0x6), region = 89 }
 0x108   :  { %391 = vsyncpa [#allocation6], 1 }
 0x109   :  { %393 = vsyncpa [#allocation6 + $0x1], 1 }
 0x10a   :  { %394 = vsyncpa [#allocation8], 1 }
 0x10b   :  { %396 = vsyncpa [#allocation8 + $0x1], 1 }

</bundles_post_ra>
